<compile_context>
chip_gen: v7x
topology: tpu7x:2x2x1
jax: 0.10.0
libtpu: 0.0.40
codegen_flags: <defaults>
</compile_context>

<pallas_src>
import functools

import numpy as np
import jax
import jax.numpy as jnp
from jax.experimental import pallas as pl
from jax.experimental.pallas import tpu as pltpu


def _dup_matrix(w, s, g):
    """0/1 duplication matrix (g*w, g*s*s*w), block-diagonal over g row-groups.

    Column  grp*(s*s*w) + r*(s*w) + s*col + k  has its single 1 in row
    grp*w + col, so y = x @ M repeats every element s times along W and emits
    the widened row s times, for each of the g image rows packed on lanes.
    """
    m = np.zeros((g * w, g * s * s * w), np.float32)
    src = np.arange(g * w)
    grp, col = src // w, src % w
    for r in range(s):          # which duplicated output image-row
        for k in range(s):      # which duplicate along W
            dst = grp * (s * s * w) + r * (s * w) + s * col + k
            m[src, dst] = 1.0
    return m


def _upsample_kernel(x_ref, m_ref, o_ref, *, n_split):
    m = m_ref[...]                                   # bf16 (gW, gN), 0/1
    x = x_ref[...]
    if n_split <= 1:
        # Input is already exactly bf16-representable (bfloat16 path):
        # one MXU pass is exact because every M column has a single 1.
        y = jnp.dot(x.astype(jnp.bfloat16), m,
                    preferred_element_type=jnp.float32)
    else:
        # Exact f32/f16/int path: split x (as f32) into components with
        # disjoint mantissa bit-ranges via masking; each component is exactly
        # bf16-representable, each bf16 pass copies it exactly, and the
        # ordered f32 sum reconstructs x bit-exactly.
        rem = x.astype(jnp.float32)
        comps = []
        for _ in range(n_split - 1):
            finite = jnp.isfinite(rem)
            hi = pltpu.bitcast(
                pltpu.bitcast(rem, jnp.int32) & jnp.int32(-65536),  # keep top 16 bits
                jnp.float32)
            hi = jnp.where(finite, hi, rem)          # propagate inf/nan untouched
            comps.append(hi)
            rem = jnp.where(finite, rem - hi, jnp.zeros_like(rem))
        comps.append(rem)
        y = jnp.dot(comps[0].astype(jnp.bfloat16), m,
                    preferred_element_type=jnp.float32)
        for c in comps[1:]:
            y = y + jnp.dot(c.astype(jnp.bfloat16), m,
                            preferred_element_type=jnp.float32)
    o_ref[...] = y.astype(o_ref.dtype)


def upsample_nearest(x, scale_factor=2, mode="nearest"):
    """Forward of the reference Upsample module for an NCHW tensor."""
    if mode != "nearest":
        raise NotImplementedError(f"mode={mode!r} not supported")
    s = int(scale_factor)
    if s < 1 or s != scale_factor:
        raise NotImplementedError("only positive integer scale factors")
    if s == 1:
        return x

    B, C, H, W = x.shape
    R = B * C * H
    out_cols = s * s * W
    dt = jnp.dtype(x.dtype)
    itemsize = dt.itemsize

    if dt == jnp.dtype(jnp.bfloat16):
        n_split = 1
    elif dt == jnp.dtype(jnp.float16):
        n_split = 2          # 11 significant bits -> two bf16-exact pieces
    else:
        n_split = 3          # float32 (and integers, exact for |x| < 2**24)

    # Lane packing: >= 512 output lanes (dense stores, full MXU N tile) while
    # K = g*W stays <= ~128-256 (full 128x128 MXU on v5e, no excess M/MXU work).
    g = 1
    while g * out_cols < 512 and g * W < 128:
        g *= 2
    while g > 1 and R % g:                 # keep the packing reshape pad-free
        g //= 2
    rows = R // g
    gW, gN = g * W, g * out_cols

    m = jnp.asarray(_dup_matrix(W, s, g), dtype=jnp.bfloat16)  # 0/1 exact in bf16
    m_bytes = int(m.size) * 2

    # Per-row VMEM footprint: double-buffered in/out tiles + f32 copy +
    # bf16 split components + f32 accumulator.
    bytes_per_row = (2 * gW * itemsize + 2 * gN * itemsize
                     + gW * (4 + 2 * 2) + gN * 4)

    if rows <= 8:
        tile_rows = rows
    else:
        t = max(8, (2 * 2 ** 20) // (gN * itemsize))   # ~2 MiB output / step
        t = min(t, -(-rows // 2))                      # >= 2 grid steps (v7x)
        t = min(t, max(8, (24 * 2 ** 20 - 2 * m_bytes) // bytes_per_row))
        t = max(8, min(t, 4096))
        tile_rows = min((t // 8) * 8, (rows // 8) * 8)
    n_tiles = pl.cdiv(rows, tile_rows)

    vmem_needed = tile_rows * bytes_per_row + 2 * m_bytes
    vmem_limit = int(min(40 * 2 ** 20,
                         max(16 * 2 ** 20, 2 * vmem_needed + (2 << 20))))

    xg = x.reshape(rows, gW)               # pure metadata reshape, no pad pass

    out2d = pl.pallas_call(
        functools.partial(_upsample_kernel, n_split=n_split),
        out_shape=jax.ShapeDtypeStruct((rows, gN), x.dtype),
        grid=(n_tiles,),
        in_specs=[
            pl.BlockSpec((tile_rows, gW), lambda i: (i, 0)),
            # Constant block index: Pallas keeps M resident (no re-DMA per step).
            pl.BlockSpec((gW, gN), lambda i: (0, 0)),
        ],
        out_specs=pl.BlockSpec((tile_rows, gN), lambda i: (i, 0)),
        compiler_params=pltpu.CompilerParams(
            dimension_semantics=("parallel",),
            vmem_limit_bytes=vmem_limit,
        ),
        cost_estimate=pl.CostEstimate(
            flops=2 * rows * gW * gN * n_split,
            transcendentals=0,
            bytes_accessed=rows * (gW + gN) * itemsize + m_bytes,
        ),
    )(xg, m)

    # Contiguous (free) reshape: (R/g, g*s*s*W) -> (B, C, s*H, s*W).
    return out2d.reshape(B, C, s * H, s * W)


if __name__ == "__main__":
    key = jax.random.PRNGKey(0)
    B, C, H, W = 2, 4, 16, 16
    x = jax.random.normal(key, (B, C, H, W), jnp.float32)

    fn = jax.jit(functools.partial(upsample_nearest, scale_factor=2))
    out = fn(x)
    jax.block_until_ready(out)

    assert out.shape == (B, C, 2 * H, 2 * W), out.shape
    ref = jnp.repeat(jnp.repeat(x, 2, axis=2), 2, axis=3)
    assert bool(jnp.allclose(out, ref, atol=1e-6, rtol=1e-6)), \
        "mismatch vs nearest-upsample reference"
    print("KERNEL_OK")
</pallas_src>

<mosaic_0001>
module attributes {stable_mosaic.version = 11 : i64} {
  func.func @_upsample_kernel(%arg0: i32, %arg1: memref<8x128xf32, #tpu.memory_space<vmem>>, %arg2: memref<128x512xbf16, #tpu.memory_space<vmem>>, %arg3: memref<8x512xf32, #tpu.memory_space<vmem>>) attributes {dimension_semantics = [#tpu.dimension_semantics<parallel>], iteration_bounds = array<i64: 2>, scalar_prefetch = 0 : i64, scratch_operands = 0 : i64, tpu.core_type = #tpu.core_type<tc>, window_params = [{transform_indices = @transform_0, window_bounds = array<i64: 8, 128>}, {pipeline_mode = #tpu.pipeline_mode<synchronous>, transform_indices = @transform_1, window_bounds = array<i64: 128, 512>}, {transform_indices = @transform_2, window_bounds = array<i64: 8, 512>}]} {
    %c0 = arith.constant 0 : index
    %c0_0 = arith.constant 0 : index
    %0 = vector.load %arg2[%c0, %c0_0] : memref<128x512xbf16, #tpu.memory_space<vmem>>, vector<128x512xbf16>
    %c0_1 = arith.constant 0 : index
    %c0_2 = arith.constant 0 : index
    %1 = vector.load %arg1[%c0_1, %c0_2] : memref<8x128xf32, #tpu.memory_space<vmem>>, vector<8x128xf32>
    %2 = tpu.weird %1 : vector<8x128xf32> -> vector<8x128xi1>
    %cst = arith.constant dense<true> : vector<8x128xi1>
    %3 = arith.xori %2, %cst : vector<8x128xi1>
    %4 = tpu.bitcast %1 : vector<8x128xf32> -> vector<8x128xi32>
    %c-65536_i32 = arith.constant -65536 : i32
    %5 = vector.broadcast %c-65536_i32 : i32 to vector<8x128xi32>
    %6 = arith.andi %4, %5 : vector<8x128xi32>
    %7 = tpu.bitcast %6 : vector<8x128xi32> -> vector<8x128xf32>
    %8 = arith.select %3, %7, %1 : vector<8x128xi1>, vector<8x128xf32>
    %9 = arith.subf %1, %8 : vector<8x128xf32>
    %cst_3 = arith.constant 0.000000e+00 : f32
    %10 = vector.broadcast %cst_3 : f32 to vector<8x128xf32>
    %11 = arith.select %3, %9, %10 : vector<8x128xi1>, vector<8x128xf32>
    %12 = tpu.weird %11 : vector<8x128xf32> -> vector<8x128xi1>
    %cst_4 = arith.constant dense<true> : vector<8x128xi1>
    %13 = arith.xori %12, %cst_4 : vector<8x128xi1>
    %14 = tpu.bitcast %11 : vector<8x128xf32> -> vector<8x128xi32>
    %c-65536_i32_5 = arith.constant -65536 : i32
    %15 = vector.broadcast %c-65536_i32_5 : i32 to vector<8x128xi32>
    %16 = arith.andi %14, %15 : vector<8x128xi32>
    %17 = tpu.bitcast %16 : vector<8x128xi32> -> vector<8x128xf32>
    %18 = arith.select %13, %17, %11 : vector<8x128xi1>, vector<8x128xf32>
    %19 = arith.subf %11, %18 : vector<8x128xf32>
    %cst_6 = arith.constant 0.000000e+00 : f32
    %20 = vector.broadcast %cst_6 : f32 to vector<8x128xf32>
    %21 = arith.select %13, %19, %20 : vector<8x128xi1>, vector<8x128xf32>
    %22 = arith.truncf %8 : vector<8x128xf32> to vector<8x128xbf16>
    %cst_7 = arith.constant dense<0.000000e+00> : vector<8x512xf32>
    %23 = tpu.matmul %22, %0, %cst_7 {dimension_numbers = #tpu.dot_dimension_numbers<[1], [0], [0], [1], [0, 0, 1, 1], [], []>} : vector<8x128xbf16>, vector<128x512xbf16>, vector<8x512xf32> -> vector<8x512xf32>
    %24 = arith.truncf %18 : vector<8x128xf32> to vector<8x128xbf16>
    %cst_8 = arith.constant dense<0.000000e+00> : vector<8x512xf32>
    %25 = tpu.matmul %24, %0, %cst_8 {dimension_numbers = #tpu.dot_dimension_numbers<[1], [0], [0], [1], [0, 0, 1, 1], [], []>} : vector<8x128xbf16>, vector<128x512xbf16>, vector<8x512xf32> -> vector<8x512xf32>
    %26 = arith.addf %23, %25 : vector<8x512xf32>
    %27 = arith.truncf %21 : vector<8x128xf32> to vector<8x128xbf16>
    %cst_9 = arith.constant dense<0.000000e+00> : vector<8x512xf32>
    %28 = tpu.matmul %27, %0, %cst_9 {dimension_numbers = #tpu.dot_dimension_numbers<[1], [0], [0], [1], [0, 0, 1, 1], [], []>} : vector<8x128xbf16>, vector<128x512xbf16>, vector<8x512xf32> -> vector<8x512xf32>
    %29 = arith.addf %26, %28 : vector<8x512xf32>
    %c0_10 = arith.constant 0 : index
    %c0_11 = arith.constant 0 : index
    %30 = vector.load %arg3[%c0_10, %c0_11] : memref<8x512xf32, #tpu.memory_space<vmem>>, vector<8x512xf32>
    tpu.vector_store %arg3[%c0_10, %c0_11], %29 {strides = array<i32>} : memref<8x512xf32, #tpu.memory_space<vmem>>, vector<8x512xf32>,
    return
  }
  func.func @transform_0(%arg0: i32) -> (i32, i32) {
    %c0_i32 = arith.constant 0 : i32
    %c0_i32_0 = arith.constant 0 : i32
    return %arg0, %c0_i32 : i32, i32
  }
  func.func @transform_1(%arg0: i32) -> (i32, i32) {
    %c0_i32 = arith.constant 0 : i32
    %c0_i32_0 = arith.constant 0 : i32
    %c0_i32_1 = arith.constant 0 : i32
    return %c0_i32, %c0_i32_0 : i32, i32
  }
  func.func @transform_2(%arg0: i32) -> (i32, i32) {
    %c0_i32 = arith.constant 0 : i32
    %c0_i32_0 = arith.constant 0 : i32
    return %arg0, %c0_i32 : i32, i32
  }
}

</mosaic_0001>

<bundles_post_ra>
// kernel: upsample_nearest.1
= control target key start
LH: loop header
LB: loop body
LE: loop exit
PB: predicated region body
PF: predicated region fallthrough
CT: control target
= control target key end

     0   :  { %s811_s9 = smov 0   ;;  %s1120_s0 = inlined_call_operand.vmem [shape: f32[16,128], index: 0, kind: input, shape index: {}]   ;;  %s1121_s1 = inlined_call_operand.vmem [shape: bf16[128,512], index: 1, kind: input, shape index: {}]   ;;  %s1122_s2 = inlined_call_operand.vmem [shape: f32[16,512], index: 2, kind: output, shape index: {}]  }
   0x1 LB: > { %s663_s10 = sadd.s32 4294967295, %s792_s9   ;;  %p667_p0 = scmp.ge.s32.totalorder %s792_s9, 1  ;;  %s792_s9 = sphi %s811_s9, %s12_s9  }
   0x2   : > { %p111_p1 = scmp.lt.s32.totalorder %s792_s9, 3 }
   0x4   : > { %p112_p2 = pnand %p667_p0, %p111_p1 }
   0x5   : > { %v822_v0 = vld [vmem:[%s1121_s1 + $0x4] ss:$16 sps:$4 sm:$0xff] (!%p112_p2)   ;;  %v827_v1 = vld [vmem:[%s1121_s1 + $0xc] ss:$16 sps:$4 sm:$0xff] (!%p112_p2)   ;;  %v794_v2 = vmov (!%p112_p2), 0   ;;  %p132_p3 = scmp.lt.s32.totalorder (!%p112_p2), %s663_s10, 1 }
   0x6   : > { %115 = sbr.rel (%p112_p2) target bundleno = 318 (0x13e), region = 28  ;;  %385 = vmatprep.mubr.bf16.mxu0 (!%p112_p2), %v794_v2  ;;  %426 = vmatprep.mubr.bf16.mxu1 (!%p112_p2), %v794_v2  ;;  %v835_v3 = vld [vmem:[%s1121_s1] ss:$16 sps:$4 sm:$0xff] (!%p112_p2)   ;;  %v840_v4 = vld [vmem:[%s1121_s1 + $0x8] ss:$16 sps:$4 sm:$0xff] (!%p112_p2)   ;;  %vm795_vm1 = vmmov (!%p112_p2), 1  }
   0x7   : > { %353 = vmatprep.subr.bf16.mxu0 (!%p112_p2), %v822_v0  ;;  %394 = vmatprep.subr.bf16.mxu1 (!%p112_p2), %v827_v1  ;;  %v846_v5 = vld [vmem:[%s1121_s1 + $0x24] ss:$16 sps:$4 sm:$0xff] (!%p112_p2)   ;;  %v853_v6 = vld [vmem:[%s1121_s1 + $0x2c] ss:$16 sps:$4 sm:$0xff] (!%p112_p2)   ;;  %v858_v7 = vld [vmem:[%s1121_s1 + $0x20] ss:$16 sps:$4 sm:$0xff] (!%p112_p2)  }
   0x8   : > { %354 = vmatpush1.bf16.msra.mxu0 (!%p112_p2), %v835_v3  ;;  %395 = vmatpush1.bf16.msra.mxu1 (!%p112_p2), %v840_v4  ;;  %v864_v8 = vld [vmem:[%s1121_s1 + $0x28] ss:$16 sps:$4 sm:$0xff] (!%p112_p2)   ;;  %v870_v9 = vld [vmem:[%s1121_s1 + $0x44] ss:$16 sps:$4 sm:$0xff] (!%p112_p2)   ;;  %v877_v10 = vld [vmem:[%s1121_s1 + $0x4c] ss:$16 sps:$4 sm:$0xff] (!%p112_p2)  }
   0x9   : > { %355 = vmatprep.subr.bf16.mxu0 (!%p112_p2), %v846_v5  ;;  %396 = vmatprep.subr.bf16.mxu1 (!%p112_p2), %v853_v6  ;;  %v882_v11 = vld [vmem:[%s1121_s1 + $0x40] ss:$16 sps:$4 sm:$0xff] (!%p112_p2)   ;;  %v887_v12 = vld [vmem:[%s1121_s1 + $0x48] ss:$16 sps:$4 sm:$0xff] (!%p112_p2)   ;;  %v894_v13 = vld [vmem:[%s1121_s1 + $0x64] ss:$16 sps:$4 sm:$0xff] (!%p112_p2)  }
   0xa   : > { %v901_v14 = vld [vmem:[%s1121_s1 + $0x6c] ss:$16 sps:$4 sm:$0xff] (!%p112_p2)   ;;  %v906_v15 = vld [vmem:[%s1121_s1 + $0x60] ss:$16 sps:$4 sm:$0xff] (!%p112_p2)   ;;  %v917_v16 = vld [vmem:[%s1121_s1 + $0x68] ss:$16 sps:$4 sm:$0xff] (!%p112_p2)  }
   0xb   : > { %v922_v17 = vld [vmem:[%s1121_s1 + $0x84] ss:$16 sps:$4 sm:$0xff] (!%p112_p2)   ;;  %v929_v18 = vld [vmem:[%s1121_s1 + $0x8c] ss:$16 sps:$4 sm:$0xff] (!%p112_p2)   ;;  %v934_v19 = vld [vmem:[%s1121_s1 + $0x80] ss:$16 sps:$4 sm:$0xff] (!%p112_p2)  }
   0xc   : > { %356 = vmatpush1.bf16.msra.mxu0 (!%p112_p2), %v858_v7  ;;  %397 = vmatpush1.bf16.msra.mxu1 (!%p112_p2), %v864_v8  ;;  %v939_v20 = vld [vmem:[%s1121_s1 + $0x88] ss:$16 sps:$4 sm:$0xff] (!%p112_p2)   ;;  %v947_v21 = vld [vmem:[%s1121_s1 + $0xa4] ss:$16 sps:$4 sm:$0xff] (!%p112_p2)   ;;  %v954_v22 = vld [vmem:[%s1121_s1 + $0xac] ss:$16 sps:$4 sm:$0xff] (!%p112_p2)  }
   0xd   : > { %357 = vmatprep.subr.bf16.mxu0 %v870_v9  ;;  %398 = vmatprep.subr.bf16.mxu1 %v877_v10  ;;  %s1126_s10 = smov (!%p132_p3, %s663_s10), 1  ;;  %v964_v23 = vld [vmem:[%s1121_s1 + $0xa0] ss:$16 sps:$4 sm:$0xff]   ;;  %v969_v24 = vld [vmem:[%s1121_s1 + $0xa8] ss:$16 sps:$4 sm:$0xff]  }
   0xe   : > { %s668_s25 = sshll.u32 %s1126_s10, 3  ;;  %v976_v25 = vld [vmem:[%s1121_s1 + $0xc4] ss:$16 sps:$4 sm:$0xff]   ;;  %v981_v26 = vld [vmem:[%s1121_s1 + $0xcc] ss:$16 sps:$4 sm:$0xff]   ;;  %s711_s27 = sshll.u32 %s1126_s10, 5 }
   0xf   : > { %s135_s4 = scalar_lea.vmem %s1120_s0, %s668_s25  ;;  %v989_v29 = vld [vmem:[%s1121_s1 + $0xc0] ss:$16 sps:$4 sm:$0xff]   ;;  %v994_v30 = vld [vmem:[%s1121_s1 + $0xc8] ss:$16 sps:$4 sm:$0xff]   ;;  %v1001_v32 = vld [vmem:[%s1121_s1 + $0xe4] ss:$16 sps:$4 sm:$0xff]   ;;  %s140_s30 = scalar_lea.vmem %s1122_s2, %s711_s27 }
  0x10   : > { %358 = vmatpush1.bf16.msra.mxu0 %v882_v11  ;;  %399 = vmatpush1.bf16.msra.mxu1 %v887_v12  ;;  %v174_v27 = vld [vmem:[%s135_s4] sm:$0xff]  ;;  %v1006_v33 = vld [vmem:[%s1121_s1 + $0xec] ss:$16 sps:$4 sm:$0xff]   ;;  %v1020_v37 = vld [vmem:[%s1121_s1 + $0xe8] ss:$16 sps:$4 sm:$0xff]  }
  0x11   : > { %359 = vmatprep.subr.bf16.mxu0 %v894_v13  ;;  %400 = vmatprep.subr.bf16.mxu1 %v901_v14  ;;  %vm175_vm0 = vweird.f32 %v174_v27  ;;  %v178_v28 = vand.u32 4294901760, %v174_v27  ;;  %v1015_v36 = vld [vmem:[%s1121_s1 + $0xe0] ss:$16 sps:$4 sm:$0xff]  }
  0x12   : > { %vm176_vm2 = vmxor %vm175_vm0, %vm795_vm1 }
  0x13   : > { %v180_v31 = vsel %vm176_vm2, %v178_v28, %v174_v27 }
  0x14   : > { %360 = vmatpush1.bf16.msra.mxu0 %v906_v15  ;;  %401 = vmatpush1.bf16.msra.mxu1 %v917_v16  ;;  %v181_v34 = vsub.f32 %v174_v27, %v180_v31  ;;  %v191_v42 = vpack.c.bf16 %v180_v31, %v180_v31 }
  0x15   : > { %361 = vmatprep.subr.bf16.mxu0 %v922_v17  ;;  %402 = vmatprep.subr.bf16.mxu1 %v929_v18 }
  0x16   : > { %v1008_v35 = vsel %vm176_vm2, %v181_v34, 0.0 }
  0x17   : > { %vm183_vm3 = vweird.f32 %v1008_v35  ;;  %v186_v38 = vand.u32 4294901760, %v1008_v35 }
  0x18   : > { %362 = vmatpush1.bf16.msra.mxu0 %v934_v19  ;;  %403 = vmatpush1.bf16.msra.mxu1 %v939_v20  ;;  %vm1027_vm4 = vmxor %vm183_vm3, %vm795_vm1 }
  0x19   : > { %363 = vmatprep.subr.bf16.mxu0 %v947_v21  ;;  %404 = vmatprep.subr.bf16.mxu1 %v954_v22  ;;  %v1034_v40 = vsel %vm1027_vm4, %v186_v38, %v1008_v35  ;;  %vm703_vm5 = vmpackc.low %vm1027_vm4, %vm1027_vm4 }
  0x1a   : > { %v192_v41 = vpack.c.bf16 %v1034_v40, %v1034_v40  ;;  %v189_v43 = vsub.f32 %v1008_v35, %v1034_v40 }
  0x1c   : > { %364 = vmatpush1.bf16.msra.mxu0 %v964_v23  ;;  %405 = vmatpush1.bf16.msra.mxu1 %v969_v24  ;;  %v704_v44 = vpack.c.bf16 %v189_v43, %v189_v43 }
  0x1d   : > { %365 = vmatprep.subr.bf16.mxu0 %v976_v25  ;;  %406 = vmatprep.subr.bf16.mxu1 %v981_v26 }
  0x20   : > { %366 = vmatpush1.bf16.msra.mxu0 %v989_v29  ;;  %407 = vmatpush1.bf16.msra.mxu1 %v994_v30 }
  0x21   : > { %367 = vmatprep.subr.bf16.mxu0 %v1001_v32  ;;  %408 = vmatprep.subr.bf16.mxu1 %v1006_v33 }
  0x24   : > { %368 = vmatpush1.bf16.msra.mxu0 %v1015_v36  ;;  %409 = vmatpush1.bf16.msra.mxu1 %v1020_v37 }
  0x25   : > { %435 = vmatprep.subr.bf16.mxu0 %v822_v0  ;;  %476 = vmatprep.subr.bf16.mxu1 %v827_v1 }
  0x27   : > { %386 = vmatmul.mubr.bf16.vlgmr.msra.gmra.mrb[0].mxu0 %v192_v41  ;;  %427 = vmatmul.mubr.bf16.vlgmr.msra.gmra.mrb[0].mxu1 %v192_v41 }
  0x28   : > { %436 = vmatpush1.bf16.msra.mxu0 %v835_v3  ;;  %477 = vmatpush1.bf16.msra.mxu1 %v840_v4 }
  0x29   : > { %437 = vmatprep.subr.bf16.mxu0 %v846_v5  ;;  %478 = vmatprep.subr.bf16.mxu1 %v853_v6 }
  0x2a   : > { %467 = vmatprep.mubr.bf16.mxu0 %v794_v2  ;;  %508 = vmatprep.mubr.bf16.mxu1 %v794_v2 }
  0x2c   : > { %438 = vmatpush1.bf16.msra.mxu0 %v858_v7  ;;  %479 = vmatpush1.bf16.msra.mxu1 %v864_v8 }
  0x2d   : > { %439 = vmatprep.subr.bf16.mxu0 %v870_v9  ;;  %480 = vmatprep.subr.bf16.mxu1 %v877_v10 }
  0x30   : > { %440 = vmatpush1.bf16.msra.mxu0 %v882_v11  ;;  %481 = vmatpush1.bf16.msra.mxu1 %v887_v12 }
  0x31   : > { %441 = vmatprep.subr.bf16.mxu0 %v894_v13  ;;  %482 = vmatprep.subr.bf16.mxu1 %v901_v14 }
  0x34   : > { %442 = vmatpush1.bf16.msra.mxu0 %v906_v15  ;;  %483 = vmatpush1.bf16.msra.mxu1 %v917_v16 }
  0x35   : > { %443 = vmatprep.subr.bf16.mxu0 %v922_v17  ;;  %484 = vmatprep.subr.bf16.mxu1 %v929_v18 }
  0x38   : > { %444 = vmatpush1.bf16.msra.mxu0 %v934_v19  ;;  %485 = vmatpush1.bf16.msra.mxu1 %v939_v20 }
  0x39   : > { %445 = vmatprep.subr.bf16.mxu0 %v947_v21  ;;  %486 = vmatprep.subr.bf16.mxu1 %v954_v22 }
  0x3c   : > { %446 = vmatpush1.bf16.msra.mxu0 %v964_v23  ;;  %487 = vmatpush1.bf16.msra.mxu1 %v969_v24 }
  0x3d   : > { %447 = vmatprep.subr.bf16.mxu0 %v976_v25  ;;  %488 = vmatprep.subr.bf16.mxu1 %v981_v26 }
  0x40   : > { %448 = vmatpush1.bf16.msra.mxu0 %v989_v29  ;;  %489 = vmatpush1.bf16.msra.mxu1 %v994_v30 }
  0x41   : > { %449 = vmatprep.subr.bf16.mxu0 %v1001_v32  ;;  %490 = vmatprep.subr.bf16.mxu1 %v1006_v33 }
  0x44   : > { %450 = vmatpush1.bf16.msra.mxu0 %v1015_v36  ;;  %491 = vmatpush1.bf16.msra.mxu1 %v1020_v37 }
  0x45   : > { %518 = vmatprep.subr.bf16.mxu0 %v822_v0  ;;  %559 = vmatprep.subr.bf16.mxu1 %v827_v1 }
  0x47   : > { %468 = vmatmul.mubr.bf16.vlgmr.msra.gmra.mrb[0].mxu0 %v191_v42  ;;  %509 = vmatmul.mubr.bf16.vlgmr.msra.gmra.mrb[0].mxu1 %v191_v42 }
  0x48   : > { %519 = vmatpush1.bf16.msra.mxu0 %v835_v3  ;;  %560 = vmatpush1.bf16.msra.mxu1 %v840_v4 }
  0x49   : > { %520 = vmatprep.subr.bf16.mxu0 %v846_v5  ;;  %561 = vmatprep.subr.bf16.mxu1 %v853_v6 }
  0x4a   : > { %550 = vmatprep.mubr.bf16.mxu0 %v794_v2  ;;  %591 = vmatprep.mubr.bf16.mxu1 %v794_v2 }
  0x4c   : > { %521 = vmatpush1.bf16.msra.mxu0 %v858_v7  ;;  %562 = vmatpush1.bf16.msra.mxu1 %v864_v8 }
  0x4d   : > { %522 = vmatprep.subr.bf16.mxu0 %v870_v9  ;;  %563 = vmatprep.subr.bf16.mxu1 %v877_v10 }
  0x50   : > { %523 = vmatpush1.bf16.msra.mxu0 %v882_v11  ;;  %564 = vmatpush1.bf16.msra.mxu1 %v887_v12 }
  0x51   : > { %524 = vmatprep.subr.bf16.mxu0 %v894_v13  ;;  %565 = vmatprep.subr.bf16.mxu1 %v901_v14 }
  0x54   : > { %525 = vmatpush1.bf16.msra.mxu0 %v906_v15  ;;  %566 = vmatpush1.bf16.msra.mxu1 %v917_v16 }
  0x55   : > { %526 = vmatprep.subr.bf16.mxu0 %v922_v17  ;;  %567 = vmatprep.subr.bf16.mxu1 %v929_v18 }
  0x58   : > { %527 = vmatpush1.bf16.msra.mxu0 %v934_v19  ;;  %568 = vmatpush1.bf16.msra.mxu1 %v939_v20 }
  0x59   : > { %528 = vmatprep.subr.bf16.mxu0 %v947_v21  ;;  %569 = vmatprep.subr.bf16.mxu1 %v954_v22 }
  0x5c   : > { %529 = vmatpush1.bf16.msra.mxu0 %v964_v23  ;;  %570 = vmatpush1.bf16.msra.mxu1 %v969_v24 }
  0x5d   : > { %530 = vmatprep.subr.bf16.mxu0 %v976_v25  ;;  %571 = vmatprep.subr.bf16.mxu1 %v981_v26 }
  0x60   : > { %531 = vmatpush1.bf16.msra.mxu0 %v989_v29  ;;  %572 = vmatpush1.bf16.msra.mxu1 %v994_v30 }
  0x61   : > { %532 = vmatprep.subr.bf16.mxu0 %v1001_v32  ;;  %573 = vmatprep.subr.bf16.mxu1 %v1006_v33 }
  0x64   : > { %533 = vmatpush1.bf16.msra.mxu0 %v1015_v36  ;;  %574 = vmatpush1.bf16.msra.mxu1 %v1020_v37 }
  0x67   : > { %705 = vmatmul.mubr.msk.bf16.vlgmr.msra.gmra.mrb[0].mxu0 %vm703_vm5, %v704_v44  ;;  %708 = vmatmul.mubr.msk.bf16.vlgmr.msra.gmra.mrb[0].mxu1 %vm703_vm5, %v704_v44 }
 0x13a   : > { %v552_v45 = vpop.f32.mrb[0].mxu0  ;;  %v593_v46 = vpop.f32.mrb[0].mxu1 }
 0x13b   : > { %604 = vst [vmem:[%s140_s30] sm:$0xff] %v552_v45  ;;  %606 = vst [vmem:[%s140_s30 + $0x10] sm:$0xff] %v593_v46  ;;  %v554_v47 = vpop.f32.mrb[1].mxu0  ;;  %v595_v48 = vpop.f32.mrb[1].mxu1 }
 0x13c   : > { %605 = vst [vmem:[%s140_s30 + $0x8] sm:$0xff] %v554_v47  ;;  %607 = vst [vmem:[%s140_s30 + $0x18] sm:$0xff] %v595_v48  ;;  %v556_v49 = vpop.f32.mrb[2].mxu0  ;;  %v597_v50 = vpop.f32.mrb[2].mxu1 }
 0x13d   : > { %v557_v51 = vpop.f32.mrb[3].mxu0  ;;  %v598_v52 = vpop.f32.mrb[3].mxu1 }
 0x13e PF: > { %s12_s9 = sadd.s32 1, %s792_s9  }
 0x13f   : > { %p9_p4 = scmp.ge.s32.totalorder %s12_s9, 4  }
 0x141   :  { %11 = sbr.rel (!%p9_p4) target bundleno = 1 (0x1), region = 58 }

</bundles_post_ra>
